<compile_context>
chip_gen: v7x
topology: tpu7x:2x2x1
jax: 0.10.0
libtpu: 0.0.40
codegen_flags: <defaults>
</compile_context>

<pallas_src>
import functools

import jax
import jax.numpy as jnp
from jax.experimental import pallas as pl
from jax.experimental.pallas import tpu as pltpu


def char_rnn_seq_kernel(ids_ref,                       # SMEM (T, B) int32, scalar-prefetched
                        h0_ref, emb_ref,               # (B, H), (V, H)
                        w_ir_ref, w_iz_ref, w_in_ref,  # (H, H) each
                        w_hr_ref, w_hz_ref, w_hn_ref,  # (H, H) each
                        b_r_ref, b_z_ref, b_in_ref, b_hn_ref,  # (1, H) each
                        w_dec_ref, b_dec_ref,          # (H, OP), (1, OP)  (lane-padded)
                        logits_ref,                    # (B, OP)   block of (T, B, OP)
                        hout_ref):                     # (B, H)    VMEM-resident carry
    t = pl.program_id(0)
    B, H = h0_ref.shape
    V = emb_ref.shape[0]

    # Initialize the carried hidden state from the incoming hidden at step 0.
    @pl.when(t == 0)
    def _():
        hout_ref[...] = h0_ref[...]

    # --- Embedding lookup (in-kernel): one-hot(B, V) @ table(V, H) on the MXU.
    col = jax.lax.broadcasted_iota(jnp.int32, (B, V), 1)
    row = jax.lax.broadcasted_iota(jnp.int32, (B, V), 0)
    one_hot = jnp.zeros((B, V), jnp.float32)
    for b in range(B):  # B is tiny; unrolled scalar reads from SMEM
        tok = ids_ref[t, b]
        one_hot = one_hot + jnp.where((row == b) & (col == tok), 1.0, 0.0)
    x = jnp.dot(one_hot, emb_ref[...], preferred_element_type=jnp.float32)   # (B, H)

    h = hout_ref[...]

    # --- GRU cell (PyTorch gate ordering r, z, n), gates lane-aligned.
    g_r = (jnp.dot(x, w_ir_ref[...], preferred_element_type=jnp.float32)
           + jnp.dot(h, w_hr_ref[...], preferred_element_type=jnp.float32)
           + b_r_ref[...])
    g_z = (jnp.dot(x, w_iz_ref[...], preferred_element_type=jnp.float32)
           + jnp.dot(h, w_hz_ref[...], preferred_element_type=jnp.float32)
           + b_z_ref[...])
    g_ni = jnp.dot(x, w_in_ref[...], preferred_element_type=jnp.float32) + b_in_ref[...]
    g_nh = jnp.dot(h, w_hn_ref[...], preferred_element_type=jnp.float32) + b_hn_ref[...]

    r = jax.nn.sigmoid(g_r)
    z = jax.nn.sigmoid(g_z)
    n = jnp.tanh(g_ni + r * g_nh)
    h_new = (1.0 - z) * n + z * h

    hout_ref[...] = h_new

    # --- Decoder (lane-dense, OP = multiple of 128).
    logits_ref[...] = (
        jnp.dot(h_new, w_dec_ref[...], preferred_element_type=jnp.float32)
        + b_dec_ref[...]
    )


def pack_params(params):
    """Convert PyTorch-layout params into the kernel layout (done once)."""
    H = params["embedding"].shape[1]
    O = params["w_dec"].shape[0]
    OP = ((O + 127) // 128) * 128            # lane-dense logits width

    w_ih, w_hh = params["w_ih"], params["w_hh"]          # (3H, H) each, rows r|z|n
    b_ih, b_hh = params["b_ih"], params["b_hh"]          # (3H,) each

    w_dec_t = params["w_dec"].T                           # (H, O)
    w_dec_p = jnp.zeros((H, OP), jnp.float32).at[:, :O].set(w_dec_t)
    b_dec_p = jnp.zeros((1, OP), jnp.float32).at[0, :O].set(params["b_dec"])

    return {
        "emb": params["embedding"],
        "w_ir": w_ih[0:H].T, "w_iz": w_ih[H:2 * H].T, "w_in": w_ih[2 * H:3 * H].T,
        "w_hr": w_hh[0:H].T, "w_hz": w_hh[H:2 * H].T, "w_hn": w_hh[2 * H:3 * H].T,
        "b_r": (b_ih[0:H] + b_hh[0:H]).reshape(1, H),
        "b_z": (b_ih[H:2 * H] + b_hh[H:2 * H]).reshape(1, H),
        "b_in": b_ih[2 * H:3 * H].reshape(1, H),
        "b_hn": b_hh[2 * H:3 * H].reshape(1, H),
        "w_dec": w_dec_p,
        "b_dec": b_dec_p,
    }


def char_rnn_forward_seq(token_seq, hidden, kp, *, out_size):
    """Run the GRU over a whole (T, B) token sequence in one pallas_call.

    Returns (logits (T, B, O), new_hidden (1, B, H)).
    """
    T, B = token_seq.shape
    V, H = kp["emb"].shape
    OP = kp["w_dec"].shape[1]
    h0 = hidden[0]                                        # (B, H)

    c2 = lambda t, ids: (0, 0)                            # constant index_map: stay resident

    grid_spec = pltpu.PrefetchScalarGridSpec(
        num_scalar_prefetch=1,
        grid=(T,),
        in_specs=[
            pl.BlockSpec((B, H), c2),       # h0
            pl.BlockSpec((V, H), c2),       # embedding table
            pl.BlockSpec((H, H), c2),       # w_ir
            pl.BlockSpec((H, H), c2),       # w_iz
            pl.BlockSpec((H, H), c2),       # w_in
            pl.BlockSpec((H, H), c2),       # w_hr
            pl.BlockSpec((H, H), c2),       # w_hz
            pl.BlockSpec((H, H), c2),       # w_hn
            pl.BlockSpec((1, H), c2),       # b_r
            pl.BlockSpec((1, H), c2),       # b_z
            pl.BlockSpec((1, H), c2),       # b_in
            pl.BlockSpec((1, H), c2),       # b_hn
            pl.BlockSpec((H, OP), c2),      # w_dec (lane-padded)
            pl.BlockSpec((1, OP), c2),      # b_dec (lane-padded)
        ],
        out_specs=[
            pl.BlockSpec((None, B, OP), lambda t, ids: (t, 0, 0)),   # per-step logits
            pl.BlockSpec((B, H), c2),                                # carried hidden
        ],
    )

    logits_pad, h_new = pl.pallas_call(
        char_rnn_seq_kernel,
        out_shape=(
            jax.ShapeDtypeStruct((T, B, OP), jnp.float32),
            jax.ShapeDtypeStruct((B, H), jnp.float32),
        ),
        grid_spec=grid_spec,
        compiler_params=pltpu.CompilerParams(
            dimension_semantics=("arbitrary",)),   # time recurrence is sequential
    )(
        token_seq.astype(jnp.int32), h0, kp["emb"],
        kp["w_ir"], kp["w_iz"], kp["w_in"],
        kp["w_hr"], kp["w_hz"], kp["w_hn"],
        kp["b_r"], kp["b_z"], kp["b_in"], kp["b_hn"],
        kp["w_dec"], kp["b_dec"],
    )
    return logits_pad[:, :, :out_size], h_new[None, :, :]


def char_rnn_forward(token_ids, hidden, kp, *, out_size):
    """Single-step forward matching the original module's forward() signature."""
    logits, h_new = char_rnn_forward_seq(token_ids[None, :], hidden, kp,
                                         out_size=out_size)
    return logits[0], h_new


def init_params(key, input_size, hidden_size, output_size):
    """PyTorch-layout parameters (shapes mirror the nn.Module)."""
    ks = jax.random.split(key, 7)
    H = hidden_size
    bound = 1.0 / (H ** 0.5)

    def u(k, shape):
        return jax.random.uniform(k, shape, jnp.float32, -bound, bound)

    return {
        "embedding": jax.random.normal(ks[0], (input_size, H), jnp.float32),
        "w_ih": u(ks[1], (3 * H, H)),
        "w_hh": u(ks[2], (3 * H, H)),
        "b_ih": u(ks[3], (3 * H,)),
        "b_hh": u(ks[4], (3 * H,)),
        "w_dec": u(ks[5], (output_size, H)),
        "b_dec": u(ks[6], (output_size,)),
    }


def reference_forward_seq(token_seq, hidden, params):
    """Pure-JAX reference matching PyTorch GRU semantics, looped over T."""
    H = params["embedding"].shape[1]
    w_ih_t, w_hh_t = params["w_ih"].T, params["w_hh"].T
    b_ih, b_hh = params["b_ih"], params["b_hh"]
    h = hidden[0]
    logits_all = []
    for t in range(token_seq.shape[0]):
        x = jnp.take(params["embedding"], token_seq[t], axis=0)
        gi = x @ w_ih_t + b_ih
        gh = h @ w_hh_t + b_hh
        r = jax.nn.sigmoid(gi[:, :H] + gh[:, :H])
        z = jax.nn.sigmoid(gi[:, H:2 * H] + gh[:, H:2 * H])
        n = jnp.tanh(gi[:, 2 * H:] + r * gh[:, 2 * H:])
        h = (1.0 - z) * n + z * h
        logits_all.append(h @ params["w_dec"].T + params["b_dec"])
    return jnp.stack(logits_all, axis=0), h[None]


if __name__ == "__main__":
    input_size = 65      # vocab (printable-char style)
    hidden_size = 32
    output_size = 65
    batch = 2
    seq_len = 8

    key = jax.random.PRNGKey(0)
    k_par, k_tok = jax.random.split(key)
    params = init_params(k_par, input_size, hidden_size, output_size)
    kp = pack_params(params)

    token_seq = jax.random.randint(k_tok, (seq_len, batch), 0, input_size,
                                   dtype=jnp.int32)
    hidden0 = jnp.zeros((1, batch, hidden_size), jnp.float32)   # init_hidden (GRU)

    # Fused multi-step call (one kernel launch for the whole sequence).
    fwd_seq = jax.jit(functools.partial(char_rnn_forward_seq, out_size=output_size))
    logits_seq, h_seq = fwd_seq(token_seq, hidden0, kp)
    logits_seq = jax.block_until_ready(logits_seq)
    h_seq = jax.block_until_ready(h_seq)

    ref_logits_seq, ref_h_seq = reference_forward_seq(token_seq, hidden0, params)
    assert logits_seq.shape == (seq_len, batch, output_size)
    assert h_seq.shape == (1, batch, hidden_size)
    assert jnp.allclose(logits_seq, ref_logits_seq, atol=1e-5, rtol=1e-5)
    assert jnp.allclose(h_seq, ref_h_seq, atol=1e-5, rtol=1e-5)

    # Single-step call matching the original module forward(input, hidden).
    logits1, h1 = char_rnn_forward(token_seq[0], hidden0, kp, out_size=output_size)
    logits1 = jax.block_until_ready(logits1)
    h1 = jax.block_until_ready(h1)
    ref_l1, ref_h1 = reference_forward_seq(token_seq[:1], hidden0, params)
    assert logits1.shape == (batch, output_size)
    assert h1.shape == (1, batch, hidden_size)
    assert jnp.allclose(logits1, ref_l1[0], atol=1e-5, rtol=1e-5)
    assert jnp.allclose(h1, ref_h1, atol=1e-5, rtol=1e-5)

    print("KERNEL_OK")
</pallas_src>

<mosaic_0001>
module attributes {stable_mosaic.version = 11 : i64} {
  func.func @char_rnn_seq_kernel(%arg0: i32, %arg1: memref<8x2xi32, #tpu.memory_space<smem>>, %arg2: memref<2x32xf32, #tpu.memory_space<vmem>>, %arg3: memref<65x32xf32, #tpu.memory_space<vmem>>, %arg4: memref<32x32xf32, #tpu.memory_space<vmem>>, %arg5: memref<32x32xf32, #tpu.memory_space<vmem>>, %arg6: memref<32x32xf32, #tpu.memory_space<vmem>>, %arg7: memref<32x32xf32, #tpu.memory_space<vmem>>, %arg8: memref<32x32xf32, #tpu.memory_space<vmem>>, %arg9: memref<32x32xf32, #tpu.memory_space<vmem>>, %arg10: memref<1x32xf32, #tpu.memory_space<vmem>>, %arg11: memref<1x32xf32, #tpu.memory_space<vmem>>, %arg12: memref<1x32xf32, #tpu.memory_space<vmem>>, %arg13: memref<1x32xf32, #tpu.memory_space<vmem>>, %arg14: memref<32x128xf32, #tpu.memory_space<vmem>>, %arg15: memref<1x128xf32, #tpu.memory_space<vmem>>, %arg16: memref<1x2x128xf32, #tpu.memory_space<vmem>>, %arg17: memref<2x32xf32, #tpu.memory_space<vmem>>) attributes {dimension_semantics = [#tpu.dimension_semantics<arbitrary>], iteration_bounds = array<i64: 8>, scalar_prefetch = 1 : i64, scratch_operands = 0 : i64, tpu.core_type = #tpu.core_type<tc>, window_params = [{pipeline_mode = #tpu.pipeline_mode<synchronous>, transform_indices = @transform_0, window_bounds = array<i64: 2, 32>}, {pipeline_mode = #tpu.pipeline_mode<synchronous>, transform_indices = @transform_1, window_bounds = array<i64: 65, 32>}, {pipeline_mode = #tpu.pipeline_mode<synchronous>, transform_indices = @transform_2, window_bounds = array<i64: 32, 32>}, {pipeline_mode = #tpu.pipeline_mode<synchronous>, transform_indices = @transform_3, window_bounds = array<i64: 32, 32>}, {pipeline_mode = #tpu.pipeline_mode<synchronous>, transform_indices = @transform_4, window_bounds = array<i64: 32, 32>}, {pipeline_mode = #tpu.pipeline_mode<synchronous>, transform_indices = @transform_5, window_bounds = array<i64: 32, 32>}, {pipeline_mode = #tpu.pipeline_mode<synchronous>, transform_indices = @transform_6, window_bounds = array<i64: 32, 32>}, {pipeline_mode = #tpu.pipeline_mode<synchronous>, transform_indices = @transform_7, window_bounds = array<i64: 32, 32>}, {pipeline_mode = #tpu.pipeline_mode<synchronous>, transform_indices = @transform_8, window_bounds = array<i64: 1, 32>}, {pipeline_mode = #tpu.pipeline_mode<synchronous>, transform_indices = @transform_9, window_bounds = array<i64: 1, 32>}, {pipeline_mode = #tpu.pipeline_mode<synchronous>, transform_indices = @transform_10, window_bounds = array<i64: 1, 32>}, {pipeline_mode = #tpu.pipeline_mode<synchronous>, transform_indices = @transform_11, window_bounds = array<i64: 1, 32>}, {pipeline_mode = #tpu.pipeline_mode<synchronous>, transform_indices = @transform_12, window_bounds = array<i64: 32, 128>}, {pipeline_mode = #tpu.pipeline_mode<synchronous>, transform_indices = @transform_13, window_bounds = array<i64: 1, 128>}, {transform_indices = @transform_14, window_bounds = array<i64: 1, 2, 128>}, {pipeline_mode = #tpu.pipeline_mode<synchronous>, transform_indices = @transform_15, window_bounds = array<i64: 2, 32>}]} {
    %c0_i32 = arith.constant 0 : i32
    %0 = arith.cmpi eq, %arg0, %c0_i32 : i32
    %1 = arith.extui %0 : i1 to i32
    %c0_i32_0 = arith.constant 0 : i32
    %2 = arith.cmpi ne, %1, %c0_i32_0 : i32
    scf.if %2 {
      %c0_50 = arith.constant 0 : index
      %c0_51 = arith.constant 0 : index
      %84 = vector.load %arg2[%c0_50, %c0_51] : memref<2x32xf32, #tpu.memory_space<vmem>>, vector<2x32xf32>
      %c0_52 = arith.constant 0 : index
      %c0_53 = arith.constant 0 : index
      %85 = vector.load %arg17[%c0_52, %c0_53] : memref<2x32xf32, #tpu.memory_space<vmem>>, vector<2x32xf32>
      tpu.vector_store %arg17[%c0_52, %c0_53], %84 {strides = array<i32>} : memref<2x32xf32, #tpu.memory_space<vmem>>, vector<2x32xf32>,
    } else {
    }
    %3 = tpu.iota {dimensions = array<i32: 1>} : vector<2x65xi32>
    %4 = tpu.iota {dimensions = array<i32: 0>} : vector<2x65xi32>
    %cst = arith.constant 0.000000e+00 : f32
    %5 = vector.broadcast %cst : f32 to vector<2x65xf32>
    %6 = arith.index_cast %arg0 : i32 to index
    %c0 = arith.constant 0 : index
    %7 = memref.load %arg1[%6, %c0] : memref<8x2xi32, #tpu.memory_space<smem>>
    %c0_i32_1 = arith.constant 0 : i32
    %8 = vector.broadcast %c0_i32_1 : i32 to vector<2x65xi32>
    %9 = arith.cmpi eq, %4, %8 : vector<2x65xi32>
    %10 = vector.broadcast %7 : i32 to vector<2x65xi32>
    %11 = arith.cmpi eq, %3, %10 : vector<2x65xi32>
    %12 = arith.andi %9, %11 : vector<2x65xi1>
    %cst_2 = arith.constant 1.000000e+00 : f32
    %cst_3 = arith.constant 0.000000e+00 : f32
    %13 = vector.broadcast %cst_2 : f32 to vector<2x65xf32>
    %14 = vector.broadcast %cst_3 : f32 to vector<2x65xf32>
    %15 = arith.select %12, %13, %14 : vector<2x65xi1>, vector<2x65xf32>
    %16 = arith.addf %5, %15 : vector<2x65xf32>
    %17 = arith.index_cast %arg0 : i32 to index
    %c1 = arith.constant 1 : index
    %18 = memref.load %arg1[%17, %c1] : memref<8x2xi32, #tpu.memory_space<smem>>
    %c1_i32 = arith.constant 1 : i32
    %19 = vector.broadcast %c1_i32 : i32 to vector<2x65xi32>
    %20 = arith.cmpi eq, %4, %19 : vector<2x65xi32>
    %21 = vector.broadcast %18 : i32 to vector<2x65xi32>
    %22 = arith.cmpi eq, %3, %21 : vector<2x65xi32>
    %23 = arith.andi %20, %22 : vector<2x65xi1>
    %cst_4 = arith.constant 1.000000e+00 : f32
    %cst_5 = arith.constant 0.000000e+00 : f32
    %24 = vector.broadcast %cst_4 : f32 to vector<2x65xf32>
    %25 = vector.broadcast %cst_5 : f32 to vector<2x65xf32>
    %26 = arith.select %23, %24, %25 : vector<2x65xi1>, vector<2x65xf32>
    %27 = arith.addf %16, %26 : vector<2x65xf32>
    %c0_6 = arith.constant 0 : index
    %c0_7 = arith.constant 0 : index
    %28 = vector.load %arg3[%c0_6, %c0_7] : memref<65x32xf32, #tpu.memory_space<vmem>>, vector<65x32xf32>
    %cst_8 = arith.constant dense<0.000000e+00> : vector<2x32xf32>
    %29 = tpu.matmul %27, %28, %cst_8 {dimension_numbers = #tpu.dot_dimension_numbers<[1], [0], [0], [1], [0, 0, 1, 1], [], []>} : vector<2x65xf32>, vector<65x32xf32>, vector<2x32xf32> -> vector<2x32xf32>
    %c0_9 = arith.constant 0 : index
    %c0_10 = arith.constant 0 : index
    %30 = vector.load %arg17[%c0_9, %c0_10] : memref<2x32xf32, #tpu.memory_space<vmem>>, vector<2x32xf32>
    %c0_11 = arith.constant 0 : index
    %c0_12 = arith.constant 0 : index
    %31 = vector.load %arg4[%c0_11, %c0_12] : memref<32x32xf32, #tpu.memory_space<vmem>>, vector<32x32xf32>
    %cst_13 = arith.constant dense<0.000000e+00> : vector<2x32xf32>
    %32 = tpu.matmul %29, %31, %cst_13 {dimension_numbers = #tpu.dot_dimension_numbers<[1], [0], [0], [1], [0, 0, 1, 1], [], []>} : vector<2x32xf32>, vector<32x32xf32>, vector<2x32xf32> -> vector<2x32xf32>
    %c0_14 = arith.constant 0 : index
    %c0_15 = arith.constant 0 : index
    %33 = vector.load %arg7[%c0_14, %c0_15] : memref<32x32xf32, #tpu.memory_space<vmem>>, vector<32x32xf32>
    %cst_16 = arith.constant dense<0.000000e+00> : vector<2x32xf32>
    %34 = tpu.matmul %30, %33, %cst_16 {dimension_numbers = #tpu.dot_dimension_numbers<[1], [0], [0], [1], [0, 0, 1, 1], [], []>} : vector<2x32xf32>, vector<32x32xf32>, vector<2x32xf32> -> vector<2x32xf32>
    %35 = arith.addf %32, %34 : vector<2x32xf32>
    %c0_17 = arith.constant 0 : index
    %c0_18 = arith.constant 0 : index
    %36 = vector.load %arg10[%c0_17, %c0_18] : memref<1x32xf32, #tpu.memory_space<vmem>>, vector<1x32xf32>
    %37 = vector.broadcast %36 : vector<1x32xf32> to vector<2x32xf32>
    %38 = arith.addf %35, %37 : vector<2x32xf32>
    %c0_19 = arith.constant 0 : index
    %c0_20 = arith.constant 0 : index
    %39 = vector.load %arg5[%c0_19, %c0_20] : memref<32x32xf32, #tpu.memory_space<vmem>>, vector<32x32xf32>
    %cst_21 = arith.constant dense<0.000000e+00> : vector<2x32xf32>
    %40 = tpu.matmul %29, %39, %cst_21 {dimension_numbers = #tpu.dot_dimension_numbers<[1], [0], [0], [1], [0, 0, 1, 1], [], []>} : vector<2x32xf32>, vector<32x32xf32>, vector<2x32xf32> -> vector<2x32xf32>
    %c0_22 = arith.constant 0 : index
    %c0_23 = arith.constant 0 : index
    %41 = vector.load %arg8[%c0_22, %c0_23] : memref<32x32xf32, #tpu.memory_space<vmem>>, vector<32x32xf32>
    %cst_24 = arith.constant dense<0.000000e+00> : vector<2x32xf32>
    %42 = tpu.matmul %30, %41, %cst_24 {dimension_numbers = #tpu.dot_dimension_numbers<[1], [0], [0], [1], [0, 0, 1, 1], [], []>} : vector<2x32xf32>, vector<32x32xf32>, vector<2x32xf32> -> vector<2x32xf32>
    %43 = arith.addf %40, %42 : vector<2x32xf32>
    %c0_25 = arith.constant 0 : index
    %c0_26 = arith.constant 0 : index
    %44 = vector.load %arg11[%c0_25, %c0_26] : memref<1x32xf32, #tpu.memory_space<vmem>>, vector<1x32xf32>
    %45 = vector.broadcast %44 : vector<1x32xf32> to vector<2x32xf32>
    %46 = arith.addf %43, %45 : vector<2x32xf32>
    %c0_27 = arith.constant 0 : index
    %c0_28 = arith.constant 0 : index
    %47 = vector.load %arg6[%c0_27, %c0_28] : memref<32x32xf32, #tpu.memory_space<vmem>>, vector<32x32xf32>
    %cst_29 = arith.constant dense<0.000000e+00> : vector<2x32xf32>
    %48 = tpu.matmul %29, %47, %cst_29 {dimension_numbers = #tpu.dot_dimension_numbers<[1], [0], [0], [1], [0, 0, 1, 1], [], []>} : vector<2x32xf32>, vector<32x32xf32>, vector<2x32xf32> -> vector<2x32xf32>
    %c0_30 = arith.constant 0 : index
    %c0_31 = arith.constant 0 : index
    %49 = vector.load %arg12[%c0_30, %c0_31] : memref<1x32xf32, #tpu.memory_space<vmem>>, vector<1x32xf32>
    %50 = vector.broadcast %49 : vector<1x32xf32> to vector<2x32xf32>
    %51 = arith.addf %48, %50 : vector<2x32xf32>
    %c0_32 = arith.constant 0 : index
    %c0_33 = arith.constant 0 : index
    %52 = vector.load %arg9[%c0_32, %c0_33] : memref<32x32xf32, #tpu.memory_space<vmem>>, vector<32x32xf32>
    %cst_34 = arith.constant dense<0.000000e+00> : vector<2x32xf32>
    %53 = tpu.matmul %30, %52, %cst_34 {dimension_numbers = #tpu.dot_dimension_numbers<[1], [0], [0], [1], [0, 0, 1, 1], [], []>} : vector<2x32xf32>, vector<32x32xf32>, vector<2x32xf32> -> vector<2x32xf32>
    %c0_35 = arith.constant 0 : index
    %c0_36 = arith.constant 0 : index
    %54 = vector.load %arg13[%c0_35, %c0_36] : memref<1x32xf32, #tpu.memory_space<vmem>>, vector<1x32xf32>
    %55 = vector.broadcast %54 : vector<1x32xf32> to vector<2x32xf32>
    %56 = arith.addf %53, %55 : vector<2x32xf32>
    %57 = arith.negf %38 : vector<2x32xf32>
    %58 = math.exp %57 : vector<2x32xf32>
    %cst_37 = arith.constant 1.000000e+00 : f32
    %59 = vector.broadcast %cst_37 : f32 to vector<2x32xf32>
    %60 = arith.addf %59, %58 : vector<2x32xf32>
    %61 = arith.divf %59, %60 : vector<2x32xf32>
    %62 = arith.negf %46 : vector<2x32xf32>
    %63 = math.exp %62 : vector<2x32xf32>
    %cst_38 = arith.constant 1.000000e+00 : f32
    %64 = vector.broadcast %cst_38 : f32 to vector<2x32xf32>
    %65 = arith.addf %64, %63 : vector<2x32xf32>
    %66 = arith.divf %64, %65 : vector<2x32xf32>
    %67 = arith.mulf %61, %56 : vector<2x32xf32>
    %68 = arith.addf %51, %67 : vector<2x32xf32>
    %69 = math.tanh %68 : vector<2x32xf32>
    %cst_39 = arith.constant 1.000000e+00 : f32
    %70 = vector.broadcast %cst_39 : f32 to vector<2x32xf32>
    %71 = arith.subf %70, %66 : vector<2x32xf32>
    %72 = arith.mulf %71, %69 : vector<2x32xf32>
    %73 = arith.mulf %66, %30 : vector<2x32xf32>
    %74 = arith.addf %72, %73 : vector<2x32xf32>
    %c0_40 = arith.constant 0 : index
    %c0_41 = arith.constant 0 : index
    %75 = vector.load %arg17[%c0_40, %c0_41] : memref<2x32xf32, #tpu.memory_space<vmem>>, vector<2x32xf32>
    tpu.vector_store %arg17[%c0_40, %c0_41], %74 {strides = array<i32>} : memref<2x32xf32, #tpu.memory_space<vmem>>, vector<2x32xf32>,
    %c0_42 = arith.constant 0 : index
    %c0_43 = arith.constant 0 : index
    %76 = vector.load %arg14[%c0_42, %c0_43] : memref<32x128xf32, #tpu.memory_space<vmem>>, vector<32x128xf32>
    %cst_44 = arith.constant dense<0.000000e+00> : vector<2x128xf32>
    %77 = tpu.matmul %74, %76, %cst_44 {dimension_numbers = #tpu.dot_dimension_numbers<[1], [0], [0], [1], [0, 0, 1, 1], [], []>} : vector<2x32xf32>, vector<32x128xf32>, vector<2x128xf32> -> vector<2x128xf32>
    %c0_45 = arith.constant 0 : index
    %c0_46 = arith.constant 0 : index
    %78 = vector.load %arg15[%c0_45, %c0_46] : memref<1x128xf32, #tpu.memory_space<vmem>>, vector<1x128xf32>
    %79 = vector.broadcast %78 : vector<1x128xf32> to vector<2x128xf32>
    %80 = arith.addf %77, %79 : vector<2x128xf32>
    %c0_47 = arith.constant 0 : index
    %c0_48 = arith.constant 0 : index
    %c0_49 = arith.constant 0 : index
    %81 = vector.load %arg16[%c0_47, %c0_48, %c0_49] : memref<1x2x128xf32, #tpu.memory_space<vmem>>, vector<1x2x128xf32>
    %82 = vector.shape_cast %81 : vector<1x2x128xf32> to vector<2x128xf32>
    %83 = vector.shape_cast %80 : vector<2x128xf32> to vector<1x2x128xf32>
    tpu.vector_store %arg16[%c0_47, %c0_48, %c0_49], %83 {strides = array<i32>} : memref<1x2x128xf32, #tpu.memory_space<vmem>>, vector<1x2x128xf32>,
    return
  }
  func.func @transform_0(%arg0: i32, %arg1: memref<8x2xi32, #tpu.memory_space<smem>>) -> (i32, i32) {
    %c0_i32 = arith.constant 0 : i32
    %c0_i32_0 = arith.constant 0 : i32
    %c0_i32_1 = arith.constant 0 : i32
    return %c0_i32, %c0_i32_0 : i32, i32
  }
  func.func @transform_1(%arg0: i32, %arg1: memref<8x2xi32, #tpu.memory_space<smem>>) -> (i32, i32) {
    %c0_i32 = arith.constant 0 : i32
    %c0_i32_0 = arith.constant 0 : i32
    %c0_i32_1 = arith.constant 0 : i32
    return %c0_i32, %c0_i32_0 : i32, i32
  }
  func.func @transform_2(%arg0: i32, %arg1: memref<8x2xi32, #tpu.memory_space<smem>>) -> (i32, i32) {
    %c0_i32 = arith.constant 0 : i32
    %c0_i32_0 = arith.constant 0 : i32
    %c0_i32_1 = arith.constant 0 : i32
    return %c0_i32, %c0_i32_0 : i32, i32
  }
  func.func @transform_3(%arg0: i32, %arg1: memref<8x2xi32, #tpu.memory_space<smem>>) -> (i32, i32) {
    %c0_i32 = arith.constant 0 : i32
    %c0_i32_0 = arith.constant 0 : i32
    %c0_i32_1 = arith.constant 0 : i32
    return %c0_i32, %c0_i32_0 : i32, i32
  }
  func.func @transform_4(%arg0: i32, %arg1: memref<8x2xi32, #tpu.memory_space<smem>>) -> (i32, i32) {
    %c0_i32 = arith.constant 0 : i32
    %c0_i32_0 = arith.constant 0 : i32
    %c0_i32_1 = arith.constant 0 : i32
    return %c0_i32, %c0_i32_0 : i32, i32
  }
  func.func @transform_5(%arg0: i32, %arg1: memref<8x2xi32, #tpu.memory_space<smem>>) -> (i32, i32) {
    %c0_i32 = arith.constant 0 : i32
    %c0_i32_0 = arith.constant 0 : i32
    %c0_i32_1 = arith.constant 0 : i32
    return %c0_i32, %c0_i32_0 : i32, i32
  }
  func.func @transform_6(%arg0: i32, %arg1: memref<8x2xi32, #tpu.memory_space<smem>>) -> (i32, i32) {
    %c0_i32 = arith.constant 0 : i32
    %c0_i32_0 = arith.constant 0 : i32
    %c0_i32_1 = arith.constant 0 : i32
    return %c0_i32, %c0_i32_0 : i32, i32
  }
  func.func @transform_7(%arg0: i32, %arg1: memref<8x2xi32, #tpu.memory_space<smem>>) -> (i32, i32) {
    %c0_i32 = arith.constant 0 : i32
    %c0_i32_0 = arith.constant 0 : i32
    %c0_i32_1 = arith.constant 0 : i32
    return %c0_i32, %c0_i32_0 : i32, i32
  }
  func.func @transform_8(%arg0: i32, %arg1: memref<8x2xi32, #tpu.memory_space<smem>>) -> (i32, i32) {
    %c0_i32 = arith.constant 0 : i32
    %c0_i32_0 = arith.constant 0 : i32
    %c0_i32_1 = arith.constant 0 : i32
    return %c0_i32, %c0_i32_0 : i32, i32
  }
  func.func @transform_9(%arg0: i32, %arg1: memref<8x2xi32, #tpu.memory_space<smem>>) -> (i32, i32) {
    %c0_i32 = arith.constant 0 : i32
    %c0_i32_0 = arith.constant 0 : i32
    %c0_i32_1 = arith.constant 0 : i32
    return %c0_i32, %c0_i32_0 : i32, i32
  }
  func.func @transform_10(%arg0: i32, %arg1: memref<8x2xi32, #tpu.memory_space<smem>>) -> (i32, i32) {
    %c0_i32 = arith.constant 0 : i32
    %c0_i32_0 = arith.constant 0 : i32
    %c0_i32_1 = arith.constant 0 : i32
    return %c0_i32, %c0_i32_0 : i32, i32
  }
  func.func @transform_11(%arg0: i32, %arg1: memref<8x2xi32, #tpu.memory_space<smem>>) -> (i32, i32) {
    %c0_i32 = arith.constant 0 : i32
    %c0_i32_0 = arith.constant 0 : i32
    %c0_i32_1 = arith.constant 0 : i32
    return %c0_i32, %c0_i32_0 : i32, i32
  }
  func.func @transform_12(%arg0: i32, %arg1: memref<8x2xi32, #tpu.memory_space<smem>>) -> (i32, i32) {
    %c0_i32 = arith.constant 0 : i32
    %c0_i32_0 = arith.constant 0 : i32
    %c0_i32_1 = arith.constant 0 : i32
    return %c0_i32, %c0_i32_0 : i32, i32
  }
  func.func @transform_13(%arg0: i32, %arg1: memref<8x2xi32, #tpu.memory_space<smem>>) -> (i32, i32) {
    %c0_i32 = arith.constant 0 : i32
    %c0_i32_0 = arith.constant 0 : i32
    %c0_i32_1 = arith.constant 0 : i32
    return %c0_i32, %c0_i32_0 : i32, i32
  }
  func.func @transform_14(%arg0: i32, %arg1: memref<8x2xi32, #tpu.memory_space<smem>>) -> (i32, i32, i32) {
    %c0_i32 = arith.constant 0 : i32
    %c0_i32_0 = arith.constant 0 : i32
    %c0_i32_1 = arith.constant 0 : i32
    return %arg0, %c0_i32, %c0_i32_0 : i32, i32, i32
  }
  func.func @transform_15(%arg0: i32, %arg1: memref<8x2xi32, #tpu.memory_space<smem>>) -> (i32, i32) {
    %c0_i32 = arith.constant 0 : i32
    %c0_i32_0 = arith.constant 0 : i32
    %c0_i32_1 = arith.constant 0 : i32
    return %c0_i32, %c0_i32_0 : i32, i32
  }
}

</mosaic_0001>

<bundles_post_ra>
// kernel: char_rnn_forward_seq.1
= control target key start
LH: loop header
LB: loop body
LE: loop exit
PB: predicated region body
PF: predicated region fallthrough
CT: control target
= control target key end

     0   :  { %s2601_s0 = inlined_call_operand.vmem [shape: s32[8,2], index: 0, kind: input, shape index: {}]   ;;  %s2602_s1 = inlined_call_operand.hbm [shape: f32[2,32], index: 1, kind: input, shape index: {}]   ;;  %s2603_s2 = inlined_call_operand.vmem [shape: f32[65,32], index: 2, kind: input, shape index: {}]   ;;  %s2604_s3 = inlined_call_operand.vmem [shape: f32[32,32], index: 3, kind: input, shape index: {}]   ;;  %s2605_s4 = inlined_call_operand.vmem [shape: f32[32,32], index: 4, kind: input, shape index: {}]   ;;  %s2606_s5 = inlined_call_operand.vmem [shape: f32[32,32], index: 5, kind: input, shape index: {}]   ;;  %s2607_s6 = inlined_call_operand.vmem [shape: f32[32,32], index: 6, kind: input, shape index: {}]   ;;  %s2608_s7 = inlined_call_operand.hbm [shape: f32[32,32], index: 7, kind: input, shape index: {}]   ;;  %s2609_s8 = inlined_call_operand.hbm [shape: f32[32,32], index: 8, kind: input, shape index: {}]   ;;  %s2610_s9 = inlined_call_operand.vmem [shape: f32[1,32], index: 9, kind: input, shape index: {}]   ;;  %s2611_s10 = inlined_call_operand.vmem [shape: f32[1,32], index: 10, kind: input, shape index: {}]   ;;  %s2612_s11 = inlined_call_operand.vmem [shape: f32[1,32], index: 11, kind: input, shape index: {}]   ;;  %s2613_s12 = inlined_call_operand.hbm [shape: f32[1,32], index: 12, kind: input, shape index: {}]   ;;  %s2614_s13 = inlined_call_operand.hbm [shape: f32[32,128], index: 13, kind: input, shape index: {}]   ;;  %s2615_s14 = inlined_call_operand.hbm [shape: f32[1,128], index: 14, kind: input, shape index: {}]   ;;  %s2616_s15 = inlined_call_operand.hbm [shape: f32[8,2,128], index: 15, kind: output, shape index: {0}]   ;;  %s2617_s16 = inlined_call_operand.hbm [shape: f32[2,32], index: 16, kind: output, shape index: {1}]  }
   0x1   :  { %2634 = sst [smem:[#allocation32_spill]] %s2601_s0 }
   0x2   :  { %2635 = sst [smem:[#allocation33_spill]] %s2611_s10  ;;  %s2639_s23 = sld [smem:[#allocation32_spill]] }
   0x3   :  { %2636 = sst [smem:[#allocation34_spill]] %s2612_s11 }
   0x4   :  { %2637 = sst [smem:[#allocation35_spill]] %s2616_s15 }
   0x5   :  { %2638 = sst [smem:[#allocation36_spill]] %s2617_s16 }
   0x8   :  { %s22_s10 = sshll.u32 %s2639_s23, 4  ;;  %s23_s10 = int_to_ptr.vmem [resolvable:$true] %s22_s10 }
   0x9   :  { %s1766_s24 = scalar_lea.vmem %s23_s10, 128  ;;  %p1771_p1 = scmp.lt.s32.totalorder %s23_s10, %s23_s10 }
   0xa   :  { %p1767_p0 = scmp.ne.s32.totalorder %s23_s10, %s1766_s24  ;;  %p1772_p2 = scmp.lt.s32.totalorder %s1766_s24, %s1766_s24 }
   0xc   :  { %p1773_p3 = por %p1772_p2, %p1771_p1 }
   0xe   :  { %p1774_p4 = pnand %p1773_p3, %p1767_p0 }
  0x10   :  { %1777 = shalt.err (!%p1774_p4)  }
  0x11   :  { %s2058_s25 = smov [#allocation3]  }
  0x12   :  { %25 = dma.vmem_to_smem %s23_s10, 128, %s2058_s25, [#allocation2] }
  0x13   :  { %2016 = dma.done.wait [#allocation2], 128 }
  0x14   :  { %2017 = vsyncadd [#allocation2], 4294967168 }
  0x15   :  { %27 = sfence }
  0x16   :  { %28 = vsyncpa [#allocation5], 0 }
  0x17   :  { %29 = vsyncpa [#allocation8], 0 }
  0x18   :  { %30 = vsyncpa [#allocation11], 0 }
  0x19   :  { %31 = vsyncpa [#allocation14], 0 }
  0x1a   :  { %32 = vsyncpa [#allocation6], 0 }
  0x1b   :  { %34 = vsyncpa [#allocation6 + $0x1], 0 }
  0x1c   :  { %35 = vsyncpa [#allocation17], 0  ;;  %s2160_s26 = smov 0   ;;  %s2162_s27 = smov 0  }
  0x1d   :  { %s2164_s28 = smov 0   ;;  %s2166_s29 = smov 0  }
  0x1e LB: > { %2640 = sst [smem:[#allocation25_spill]] %s2044_s26  ;;  %s2181_s10 = sadd.s32 4294967295, %s2056_s29   ;;  %s2056_s29 = sphi %s2166_s29, %s2679_s29   ;;  %s2052_s28 = sphi %s2164_s28, %s2681_s28   ;;  %s2048_s27 = sphi %s2162_s27, %s2683_s27   ;;  %s2044_s26 = sphi %s2160_s26, %s2682_s26  }
  0x1f   : > { %2641 = sst [smem:[#allocation26_spill]] %s2052_s28  ;;  %s1406_s30 = sadd.s32 4294967294, %s2056_s29  }
  0x20   : > { %2642 = sst [smem:[#allocation27_spill]] %s2056_s29  ;;  %s2185_s0 = sadd.s32 1, %s2056_s29  }
  0x21   : > { %2643 = sst [smem:[#allocation28_spill]] %s2185_s0  ;;  %s342_s17 = sadd.s32 1, %s2052_s28 }
  0x22   : > { %s339_s18 = ssub.s32 %s2056_s29, %s2185_s0  ;;  %p352_p5 = scmp.ne.s32.totalorder %s2052_s28, %s2048_s27 }
  0x23   : > { %p340_p6 = scmp.eq.s32.totalorder %s339_s18, 0  ;;  %p2624_p7 = scmp.eq.s32.totalorder %s2181_s10, 7 }
  0x24   : > { %p358_p8 = scmp.ne.s32.totalorder %s2048_s27, %s2044_s26  ;;  %p359_p9 = scmp.eq.s32.totalorder %s1406_s30, 7 }
  0x25   : > { %s2196_s19 = scalar_select %p340_p6, %s2052_s28, %s342_s17  }
  0x26   : > { %p2200_p10 = por %p2624_p7, %p352_p5  ;;  %p2204_p11 = por %p359_p9, %p358_p8 }
  0x27   : > { %2644 = sst [smem:[#allocation29_spill]] %s2196_s19  ;;  %p1407_p12 = scmp.ge.s32.totalorder %s2056_s29, 1 }
  0x28   : > { %s2645_s20 = scalar_select %p2200_p10, 1, 0 }
  0x29   : > { %s2647_s21 = scalar_select %p2204_p11, 1, 0 }
  0x2a   : > { %2646 = sst [smem:[#allocation30_spill]] %s2645_s20  ;;  %p387_p13 = scmp.lt.s32.totalorder %s2056_s29, 9 }
  0x2b   : > { %2648 = sst [smem:[#allocation31_spill]] %s2647_s21  ;;  %p2625_p1 = scmp.eq.s32.totalorder %s2181_s10, 0 }
  0x2c   : > { %p2212_p2 = pnand %p1407_p12, %p387_p13  ;;  %s2059_s23 = smov [#allocation7]  }
  0x2d   : > { %s425_s24 = sshll.u32 %s2059_s23, 4  ;;  %s2060_s30 = smov [#allocation10]   ;;  %s2218_s24 = int_to_ptr.vmem [resolvable:$true] %s425_s24 }
  0x2e   : > { %s2649_s22 = scalar_select %p2212_p2, 1, 0 }
  0x2f   : > { %p1673_p3 = pneg %p2212_p2  ;;  %s461_s17 = sshll.u32 %s2060_s30, 4  ;;  %s2226_s17 = int_to_ptr.vmem [resolvable:$true] %s461_s17 }
  0x30   : > { %s2061_s18 = smov [#allocation4]   ;;  %s1778_s23 = scalar_lea.hbm %s2608_s7, 512 }
  0x31   : > { %p2222_p4 = pnand %p2625_p1, %p1673_p3  ;;  %s2228_s19 = sshll.u32 %s2061_s18, 4  ;;  %s401_s19 = int_to_ptr.vmem [resolvable:$true] %s2228_s19 }
  0x32   : > { %p1779_p5 = scmp.ne.s32.totalorder %s2608_s7, %s1778_s23  ;;  %p1785_p12 = scmp.lt.u32.totalorder %s1778_s23, %s2608_s7 }
  0x33   : > { %p2238_p6 = pneg %p2222_p4 }
  0x35   : > { %p1781_p8 = pnand %p2238_p6, %p1779_p5 }
  0x37   : > { %p1782_p9 = pneg %p1781_p8 }
  0x39   : > { %p1787_p13 = pnand %p1785_p12, %p1782_p9 }
  0x3b   : > { %1790 = shalt.err (!%p1787_p13)
}
  0x3c   : > { %s1791_s26 = scalar_lea.vmem %s2218_s24, 512  ;;  %p1799_p1 = scmp.lt.s32.totalorder %s2218_s24, %s2218_s24 }
  0x3d   : > { %p1792_p3 = scmp.ne.s32.totalorder %s2218_s24, %s1791_s26  ;;  %p1800_p11 = scmp.lt.s32.totalorder %s1791_s26, %s1791_s26 }
  0x3f   : > { %p1794_p7 = pnand %p1792_p3, %p2238_p6  ;;  %p1801_p5 = por %p1800_p11, %p1799_p1 }
  0x41   : > { %p1795_p0 = pneg %p1794_p7 }
  0x43   : > { %p1802_p8 = pnand %p1801_p5, %p1795_p0 }
  0x45   : > { %1805 = shalt.err (!%p1802_p8)
}
  0x46   : > { %s2632_s28 = smov 128   ;;  %s2063_s0 = smov 8  }
  0x47   : > { %1679 = dma.hbm_to_vmem [thread:$0]  (!%p2222_p4), %s2608_s7, 512, %s2218_s24, [#allocation8], %s2632_s28, %s2632_s28, %s2063_s0  }
  0x48   : > { %s1806_s26 = scalar_lea.hbm %s2613_s12, 16 }
  0x49   : > { %p1807_p7 = scmp.ne.s32.totalorder %s2613_s12, %s1806_s26  ;;  %p1813_p1 = scmp.lt.u32.totalorder %s1806_s26, %s2613_s12 }
  0x4b   : > { %p1809_p11 = pnand %p1807_p7, %p2238_p6 }
  0x4d   : > { %p1810_p0 = pneg %p1809_p11 }
  0x4f   : > { %p1815_p9 = pnand %p1813_p1, %p1810_p0 }
  0x51   : > { %1818 = shalt.err (!%p1815_p9)
}
  0x52   : > { %s1819_s24 = scalar_lea.vmem %s2226_s17, 16  ;;  %s1826_s15 = scalar_lea.vmem %s2226_s17, 32 }
  0x53   : > { %p1820_p12 = scmp.ne.s32.totalorder %s2226_s17, %s1819_s24  ;;  %p1827_p5 = scmp.lt.s32.totalorder %s2226_s17, %s2226_s17 }
  0x54   : > { %p1828_p8 = scmp.lt.s32.totalorder %s1826_s15, %s1819_s24 }
  0x55   : > { %p1822_p13 = pnand %p1820_p12, %p2238_p6 }
  0x56   : > { %p1829_p7 = por %p1828_p8, %p1827_p5 }
  0x57   : > { %p1823_p3 = pneg %p1822_p13 }
  0x59   : > { %p1830_p11 = pnand %p1829_p7, %p1823_p3 }
  0x5b   : > { %1833 = shalt.err (!%p1830_p11)
}
  0x5c   : > { %1685 = dma.hbm_to_vmem [thread:$0]  (!%p2222_p4), %s2613_s12, 16, %s2226_s17, [#allocation11]  }
  0x5d   : > { %s1834_s23 = scalar_lea.hbm %s2602_s1, 32 }
  0x5e   : > { %p1835_p0 = scmp.ne.s32.totalorder %s2602_s1, %s1834_s23  ;;  %p1841_p12 = scmp.lt.u32.totalorder %s1834_s23, %s2602_s1 }
  0x60   : > { %p1837_p1 = pnand %p1835_p0, %p2238_p6 }
  0x62   : > { %p1838_p9 = pneg %p1837_p1 }
  0x64   : > { %p1843_p13 = pnand %p1841_p12, %p1838_p9 }
  0x66   : > { %1846 = shalt.err (!%p1843_p13)
}
  0x67   : > { %s1847_s15 = scalar_lea.vmem %s401_s19, 32  ;;  %p1855_p7 = scmp.lt.s32.totalorder %s401_s19, %s401_s19 }
  0x68   : > { %p1848_p3 = scmp.ne.s32.totalorder %s401_s19, %s1847_s15  ;;  %p1856_p11 = scmp.lt.s32.totalorder %s1847_s15, %s1847_s15 }
  0x6a   : > { %p1850_p5 = pnand %p1848_p3, %p2238_p6  ;;  %p1857_p10 = por %p1856_p11, %p1855_p7 }
  0x6c   : > { %p1851_p8 = pneg %p1850_p5 }
  0x6e   : > { %p1858_p2 = pnand %p1857_p10, %p1851_p8 }
  0x70   : > { %1861 = shalt.err (!%p1858_p2)
}
  0x71   : > { %1676 = dma.hbm_to_vmem [thread:$0]  (!%p2222_p4), %s2602_s1, 32, %s401_s19, [#allocation5]  }
  0x72   : > { %s2064_s16 = smov [#allocation9]   ;;  %s2065_s21 = smov [#allocation12]  }
  0x73   : > { %s438_s20 = sshll.u32 %s2064_s16, 4  ;;  %s471_s23 = sshll.u32 %s2065_s21, 4  ;;  %s439_s20 = int_to_ptr.vmem [resolvable:$true] %s438_s20  ;;  %s472_s23 = int_to_ptr.vmem [resolvable:$true] %s471_s23 }
  0x74   : > { %s1862_s26 = scalar_lea.hbm %s2609_s8, 512 }
  0x75   : > { %p1863_p10 = scmp.ne.s32.totalorder %s2609_s8, %s1862_s26  ;;  %p1869_p1 = scmp.lt.u32.totalorder %s1862_s26, %s2609_s8 }
  0x77   : > { %p1865_p2 = pnand %p1863_p10, %p2238_p6 }
  0x79   : > { %p1866_p0 = pneg %p1865_p2 }
  0x7b   : > { %p1871_p9 = pnand %p1869_p1, %p1866_p0 }
  0x7d   : > { %1874 = shalt.err (!%p1871_p9)
}
  0x7e   : > { %s1875_s19 = scalar_lea.vmem %s439_s20, 512  ;;  %p1883_p5 = scmp.lt.s32.totalorder %s439_s20, %s439_s20 }
  0x7f   : > { %p1876_p12 = scmp.ne.s32.totalorder %s439_s20, %s1875_s19  ;;  %p1884_p8 = scmp.lt.s32.totalorder %s1875_s19, %s1875_s19 }
  0x81   : > { %p1878_p13 = pnand %p1876_p12, %p2238_p6  ;;  %p1885_p7 = por %p1884_p8, %p1883_p5 }
  0x83   : > { %p1879_p3 = pneg %p1878_p13 }
  0x85   : > { %p1886_p11 = pnand %p1885_p7, %p1879_p3 }
  0x87   : > { %1889 = shalt.err (!%p1886_p11)
}
  0x88   : > { %s2652_s11 = smov 128   ;;  %s1890_s18 = scalar_lea.hbm %s2614_s13, 512 }
  0x89   : > { %1682 = dma.hbm_to_vmem [thread:$0]  (!%p2222_p4), %s2609_s8, 512, %s439_s20, [#allocation8], %s2652_s11, %s2652_s11, %s2063_s0  }
  0x8a   : > { %p1891_p10 = scmp.ne.s32.totalorder %s2614_s13, %s1890_s18  ;;  %p1897_p1 = scmp.lt.u32.totalorder %s1890_s18, %s2614_s13 }
  0x8c   : > { %p1893_p2 = pnand %p1891_p10, %p2238_p6 }
  0x8e   : > { %p1894_p0 = pneg %p1893_p2 }
  0x90   : > { %p1899_p9 = pnand %p1897_p1, %p1894_p0 }
  0x92   : > { %1902 = shalt.err (!%p1899_p9)
}
  0x93   : > { %s1903_s19 = scalar_lea.vmem %s472_s23, 512  ;;  %p1911_p5 = scmp.lt.s32.totalorder %s472_s23, %s472_s23 }
  0x94   : > { %p1904_p12 = scmp.ne.s32.totalorder %s472_s23, %s1903_s19  ;;  %p1912_p8 = scmp.lt.s32.totalorder %s1903_s19, %s1903_s19 }
  0x96   : > { %p1906_p13 = pnand %p1904_p12, %p2238_p6  ;;  %p1913_p7 = por %p1912_p8, %p1911_p5 }
  0x98   : > { %p1907_p3 = pneg %p1906_p13 }
  0x9a   : > { %p1914_p11 = pnand %p1913_p7, %p1907_p3 }
  0x9c   : > { %1917 = shalt.err (!%p1914_p11)
}
  0x9d   : > { %1688 = dma.hbm_to_vmem [thread:$0]  (!%p2222_p4), %s2614_s13, 512, %s472_s23, [#allocation11], %s2652_s11, %s2652_s11, %s2063_s0  }
  0x9e   : > { %s2066_s16 = smov [#allocation13]   ;;  %s1918_s26 = scalar_lea.hbm %s2615_s14, 16 }
  0x9f   : > { %s485_s21 = sshll.u32 %s2066_s16, 4  ;;  %p1919_p10 = scmp.ne.s32.totalorder %s2615_s14, %s1918_s26  ;;  %s486_s21 = int_to_ptr.vmem [resolvable:$true] %s485_s21 }
  0xa0   : > { %p1925_p1 = scmp.lt.u32.totalorder %s1918_s26, %s2615_s14 }
  0xa1   : > { %p1921_p2 = pnand %p1919_p10, %p2238_p6 }
  0xa3   : > { %p1922_p0 = pneg %p1921_p2 }
  0xa5   : > { %p1927_p9 = pnand %p1925_p1, %p1922_p0 }
  0xa7   : > { %1930 = shalt.err (!%p1927_p9)
}
  0xa8   : > { %s1931_s0 = scalar_lea.vmem %s486_s21, 16  ;;  %s1938_s23 = scalar_lea.vmem %s486_s21, 32 }
  0xa9   : > { %p1932_p12 = scmp.ne.s32.totalorder %s486_s21, %s1931_s0  ;;  %p1939_p5 = scmp.lt.s32.totalorder %s486_s21, %s486_s21 }
  0xaa   : > { %p1940_p8 = scmp.lt.s32.totalorder %s1938_s23, %s1931_s0 }
  0xab   : > { %p1934_p13 = pnand %p1932_p12, %p2238_p6 }
  0xac   : > { %p1941_p7 = por %p1940_p8, %p1939_p5 }
  0xad   : > { %p1935_p3 = pneg %p1934_p13 }
  0xaf   : > { %p1942_p11 = pnand %p1941_p7, %p1935_p3 }
  0xb1   : > { %1945 = shalt.err (!%p1942_p11)
}
  0xb2   : > { %1691 = dma.hbm_to_vmem [thread:$0]  (!%p2222_p4), %s2615_s14, 16, %s486_s21, [#allocation14]  }
  0xb3   : > { %p2653_p10 = scmp.ne.s32.totalorder %s2649_s22, 0 }
  0xb4   : > { %p2654_p2 = scmp.eq.s32.totalorder (!%p2653_p10), %s2181_s10, 0 }
  0xb5   : > { %498 = sbr.rel (%p2653_p10) target bundleno = 933 (0x3a5), region = 76 }
  0xbc   : > { %2019 = dma.done.wait (%p2654_p2), [#allocation5], 32   ;;  %p2655_p6 = pmov %p2654_p2 }
  0xbd   : > { %p2656_p0 = pmov %p2654_p2 }
  0xbe   : > { %2021 = vsyncadd (%p2655_p6), [#allocation5], 4294967264 }
  0xbf   : > { %2023 = dma.done.wait (%p2656_p0), [#allocation8], 1024   ;;  %p2657_p1 = pmov %p2656_p0 }
  0xc0   : > { %p2658_p9 = pmov %p2656_p0 }
  0xc1   : > { %2025 = vsyncadd (%p2657_p1), [#allocation8], 4294966272 }
  0xc2   : > { %2027 = dma.done.wait (%p2658_p9), [#allocation11], 528   ;;  %p2659_p4 = pmov %p2656_p0 }
  0xc3   : > { %p2660_p12 = pmov %p2656_p0 }
  0xc4   : > { %2029 = vsyncadd (%p2659_p4), [#allocation11], 4294966768 }
  0xc5   : > { %2031 = dma.done.wait (%p2660_p12), [#allocation14], 16   ;;  %p2661_p13 = pmov %p2656_p0 }
  0xc6   : > { %s556_s29 = sand.u32 1, %s2048_s27   ;;  %p2662_p3 = scmp.ne.s32.totalorder %s2181_s10, 0 }
  0xc7   : > { %2033 = vsyncadd (%p2661_p13), [#allocation14], 4294967280  ;;  %s2386_s22 = sshll.u32 %s556_s29, 1  ;;  %v565_v0 = vld [vmem:[#allocation4] sm:$0x3] (!%p2662_p3)  ;;  %vm566_vm0 = vcmask (!%p2662_p3), 254976  }
  0xc8   : > { %s558_s25 = scalar_lea.vmem [#allocation15], %s2386_s22  ;;  %564 = sbr.rel (%p2662_p3) target bundleno = 207 (0xcf), region = 104  ;;  %567 = vst.msk [vmem:[#allocation16] sm:$0x3] (!%p2662_p3), %vm566_vm0, %v565_v0 }
  0xcf PF: > { %v588_v1 = vld [vmem:[%s2603_s2] sm:$0xff]  ;;  %v589_v2 = vld [vmem:[%s2603_s2 + $0x8] sm:$0xff]  ;;  %v590_v3 = vld [vmem:[%s2603_s2 + $0x10] sm:$0xff]  ;;  %v568_v4 = vlaneseq  ;;  %v2067_v5 = vmov 0.0|0.0   ;;  %s1423_s17 = sshll.u32 %s2181_s10, 7  ;;  %vm2068_vm1 = vmmov 0  }
  0xd0   : > { %1589 = vmatprep.subr.bf16.mxu0 %v2067_v5  ;;  %v1590_v6 = vpack.c.bf16 %v589_v2, %v588_v1  ;;  %v591_v7 = vld [vmem:[%s2603_s2 + $0x18] sm:$0xff]  ;;  %1601 = vmatprep.subr.bf16.mxu1 %v2067_v5  ;;  %v2069_v8 = vmov 0.0   ;;  %s573_s19 = sld [smem:[#allocation3 + %s1423_s17]]  ;;  %s580_s0 = sadd.s32 1, %s1423_s17  ;;  %v680_v10 = vld [vmem:[%s2607_s6] sm:$0xff]  ;;  %v681_v11 = vld [vmem:[%s2607_s6 + $0x8] sm:$0xff] }
  0xd1   : > { %1509 = vmatprep.mubr.msk.f32.mxu0 %vm2068_vm1, %v2069_v8  ;;  %1520 = vmatprep.mubr.msk.f32.mxu1 %vm2068_vm1, %v2069_v8  ;;  %v1593_v9 = vpack.c.bf16 %v591_v7, %v590_v3  ;;  %v682_v12 = vld [vmem:[%s2607_s6 + $0x10] sm:$0xff]  ;;  %v592_v13 = vld [vmem:[%s2603_s2 + $0x20] sm:$0xff]  ;;  %v593_v14 = vld [vmem:[%s2603_s2 + $0x28] sm:$0xff]  ;;  %v571_v15 = vshrl.u32 %v568_v4, 7  ;;  %s581_s15 = sld [smem:[#allocation3 + %s580_s0]]  ;;  %v1602_v16 = vpack.c.bf16 %v681_v11, %v680_v10  ;;  %v569_v18 = vand.u32 127, %v568_v4 }
  0xd2   : > { %1591 = vmatpush3.bf16.msra.mxu0 %v1590_v6  ;;  %v683_v17 = vld [vmem:[%s2607_s6 + $0x18] sm:$0xff]  ;;  %v1596_v20 = vpack.c.bf16 %v593_v14, %v592_v13  ;;  %v676_v21 = vld [vmem:[%s2604_s3] sm:$0xff]  ;;  %v677_v22 = vld [vmem:[%s2604_s3 + $0x8] sm:$0xff]  ;;  %vm684_vm5 = vcmask 261120   ;;  %vm601_vm9 = vcmask 1040384   ;;  %vm597_vm10 = vcmask 531456  }
  0xd3   : > { %1592 = vmatprep.subr.bf16.mxu0 %v2067_v5  ;;  %1603 = vmatpush3.bf16.msra.mxu1 %v1602_v16  ;;  %v1605_v19 = vpack.c.bf16 %v683_v17, %v682_v12  ;;  %v594_v23 = vld [vmem:[%s2603_s2 + $0x30] sm:$0xff]  ;;  %v595_v24 = vld [vmem:[%s2603_s2 + $0x38] sm:$0xff]  ;;  %vm574_vm2 = vcmp.eq.s32.totalorder %v571_v15, 0  ;;  %vm582_vm3 = vcmp.eq.s32.totalorder %v571_v15, 1  ;;  %v2443_v27 = vld [vmem:[#allocation16] sm:$0x3]  ;;  %v1608_v28 = vpack.c.bf16 %v677_v22, %v676_v21 }
  0xd4   : > { %1604 = vmatprep.subr.bf16.mxu1 %v2067_v5  ;;  %v1599_v29 = vpack.c.bf16 %v595_v24, %v594_v23  ;;  %v678_v30 = vld [vmem:[%s2604_s3 + $0x10] sm:$0xff]  ;;  %v679_v31 = vld [vmem:[%s2604_s3 + $0x18] sm:$0xff]  ;;  %v839_v34 = vld [vmem:[%s2605_s4] sm:$0xff]  ;;  %s2663_s30 = sld [smem:[#allocation33_spill]]  ;;  %s2664_s24 = sld [smem:[#allocation34_spill]]  ;;  %vm1176_vm11 = vcmask 254976  }
  0xd5   : > { %v840_v35 = vld [vmem:[%s2605_s4 + $0x8] sm:$0xff]  ;;  %v1611_v36 = vpack.c.bf16 %v679_v31, %v678_v30  ;;  %v596_v37 = vld [vmem:[%s2603_s2 + $0x40] sm:$0x1]  ;;  %v841_v40 = vld [vmem:[%s2605_s4 + $0x10] sm:$0xff]  ;;  %s2070_s17 = smov [#allocation16]   ;;  %p2665_p8 = scmp.eq.s32.totalorder %s2181_s10, 7 }
  0xd6   : > { %1594 = vmatpush3.bf16.msra.mxu0 %v1593_v9  ;;  %v575_v25 = vstv %s573_s19  ;;  %v1620_v39 = vpack.c.bf16 %v840_v35, %v839_v34  ;;  %v842_v41 = vld [vmem:[%s2605_s4 + $0x18] sm:$0xff]  ;;  %v843_v45 = vld [vmem:[#allocation7] sm:$0xff]  ;;  %v844_v46 = vld [vmem:[#allocation7 + $0x8] sm:$0xff]  ;;  %s1288_s19 = sshll.u32 %s2070_s17, 4  ;;  %s1289_s19 = int_to_ptr.vmem [resolvable:$true] %s1288_s19 }
  0xd7   : > { %1595 = vmatprep.subr.bf16.mxu0 %v2067_v5  ;;  %vm576_vm4 = vcmp.eq.s32.totalorder %v569_v18, %v575_v25  ;;  %v583_v26 = vstv %s581_s15  ;;  %1606 = vmatpush3.bf16.msra.mxu1 %v1605_v19  ;;  %v1623_v42 = vpack.c.bf16 %v842_v41, %v841_v40  ;;  %v1076_v47 = vld [vmem:[#allocation9] sm:$0xff]  ;;  %v1077_v48 = vld [vmem:[#allocation9 + $0x8] sm:$0xff]  ;;  %v1614_v49 = vpack.c.bf16 %v844_v46, %v843_v45  ;;  %v845_v50 = vld [vmem:[#allocation7 + $0x10] sm:$0xff]  ;;  %s1946_s15 = scalar_lea.vmem %s1289_s19, 32  ;;  %p1953_p10 = scmp.lt.s32.totalorder %s1289_s19, %s1289_s19 }
  0xd8   : > { %vm577_vm6 = vmand %vm574_vm2, %vm576_vm4  ;;  %vm584_vm7 = vcmp.eq.s32.totalorder %v569_v18, %v583_v26  ;;  %1607 = vmatprep.subr.bf16.mxu1 %v2067_v5  ;;  %v846_v51 = vld [vmem:[#allocation7 + $0x18] sm:$0xff]  ;;  %v1632_v52 = vpack.c.bf16 %v1077_v48, %v1076_v47  ;;  %v1078_v54 = vld [vmem:[#allocation9 + $0x10] sm:$0xff]  ;;  %p1947_p5 = scmp.ne.s32.totalorder %s1289_s19, %s1946_s15  ;;  %p1954_p2 = scmp.lt.s32.totalorder %s1946_s15, %s1946_s15 }
  0xd9   : > { %vm585_vm8 = vmand %vm582_vm3, %vm584_vm7  ;;  %v578_v32 = vsel %vm577_vm6, 1.0, %v2069_v8  ;;  %v1079_v55 = vld [vmem:[#allocation9 + $0x18] sm:$0xff]  ;;  %v1617_v57 = vpack.c.bf16 %v846_v51, %v845_v50  ;;  %v996_v59 = vld [vmem:[%s2606_s5 + $0x8] sm:$0xff] }
  0xda   : > { %1597 = vmatpush3.bf16.msra.mxu0 %v1596_v20  ;;  %v586_v33 = vsel %vm585_vm8, 1.0, %v2069_v8  ;;  %1521 = vmatmul.mubr.msk.f32.vlgmr.msra.gmra.mrb[0].mxu1 %vm684_vm5, %v2443_v27  ;;  %v995_v58 = vld [vmem:[%s2606_s5] sm:$0xff]  ;;  %v1635_v60 = vpack.c.bf16 %v1079_v55, %v1078_v54  ;;  %v997_v62 = vld [vmem:[%s2606_s5 + $0x10] sm:$0xff]  ;;  %v998_v63 = vld [vmem:[%s2606_s5 + $0x18] sm:$0xff]  ;;  %p1948_p7 = pnand %p1947_p5, %p2665_p8  ;;  %p1955_p6 = por %p1954_p2, %p1953_p10 }
  0xdb   : > { %1598 = vmatprep.subr.bf16.mxu0 %v2067_v5  ;;  %1609 = vmatpush3.bf16.msra.mxu1 %v1608_v28  ;;  %v587_v38 = vadd.f32 %v586_v33, %v578_v32  ;;  %v1626_v61 = vpack.c.bf16 %v996_v59, %v995_v58  ;;  %v1629_v0 = vpack.c.bf16 %v998_v63, %v997_v62  ;;  %v1178_v1 = vld [vmem:[#allocation12] sm:$0xff]  ;;  %v1179_v2 = vld [vmem:[#allocation12 + $0x8] sm:$0xff]  ;;  %v1180_v3 = vld [vmem:[#allocation12 + $0x10] sm:$0xff] }
  0xdc   : > { %1531 = vmatprep.mubr.msk.f32.mxu1 %vm2068_vm1, %v2069_v8  ;;  %1610 = vmatprep.subr.bf16.mxu1 %v2067_v5  ;;  %v1638_v4 = vpack.c.bf16 %v1179_v2, %v1178_v1  ;;  %v1181_v6 = vld [vmem:[#allocation12 + $0x18] sm:$0xff]  ;;  %p1949_p11 = pneg %p1948_p7 }
  0xdd   : > { %v1641_v7 = vpack.c.bf16 %v1181_v6, %v1180_v3  ;;  %v1428_v10 = vld [vmem:[%s2610_s9] ss:$0 sm:$0xff]  ;;  %v1434_v28 = vld [vmem:[#allocation10] ss:$0 sm:$0xff] }
  0xde   : > { %1600 = vmatpush3.bf16.msra.mxu0 %v1599_v29  ;;  %v1431_v17 = vld [vmem:[%s2663_s30] ss:$0 sm:$0xff]  ;;  %p1956_p0 = pnand %p1955_p6, %p1949_p11 }
  0xdf   : > { %1507 = vmatprep.subr.mxu0 %v2069_v8  ;;  %1612 = vmatpush3.bf16.msra.mxu1 %v1611_v36  ;;  %v1432_v32 = vld [vmem:[%s2664_s24] ss:$0 sm:$0xff] }
  0xe0   : > { %1613 = vmatprep.subr.bf16.mxu1 %v2067_v5 }
  0xe2   : > { %1508 = vmatpush3.msk.msra.mxu0 %vm601_vm9, %v596_v37 }
  0xe3   : > { %1510 = vmatmul.mubr.msk.f32.vlgmr.msra.gmra.mrb[0].mxu0 %vm597_vm10, %v587_v38  ;;  %1619 = vmatprep.subr.bf16.mxu0 %v2067_v5 }
  0xe4   : > { %1621 = vmatpush3.bf16.msra.mxu0 %v1620_v39  ;;  %1553 = vmatprep.mubr.msk.f32.mxu0 %vm2068_vm1, %v2069_v8 }
  0xe5   : > { %1622 = vmatprep.subr.bf16.mxu0 %v2067_v5 }
  0xe8   : > { %1624 = vmatpush3.bf16.msra.mxu0 %v1623_v42 }
  0xe9   : > { %1631 = vmatprep.subr.bf16.mxu0 %v2067_v5 }
 0x1ad   : > { %v754_v43 = vpop.f32.mrb[0].mxu1 }
 0x1ae   : > { %v1522_v44 = vpop.f32.mrb[1].mxu1 }
 0x1b6   : > { %v671_v53 = vpop.f32.mrb[0].mxu0 }
 0x1b7   : > { %v1511_v56 = vpop.f32.mrb[1].mxu0  ;;  %1532 = vmatmul.mubr.msk.f32.vlgmr.msra.gmra.mrb[2].mxu1 %vm684_vm5, %v671_v53  ;;  %1554 = vmatmul.mubr.msk.f32.vlgmr.msra.gmra.mrb[2].mxu0 %vm684_vm5, %v671_v53 }
 0x1b8   : > { %1615 = vmatpush3.bf16.msra.mxu1 %v1614_v49  ;;  %1542 = vmatprep.mubr.msk.f32.mxu1 %vm2068_vm1, %v2069_v8 }
 0x1b9   : > { %1616 = vmatprep.subr.bf16.mxu1 %v2067_v5  ;;  %1633 = vmatpush3.bf16.msra.mxu0 %v1632_v52 }
 0x1ba   : > { %1634 = vmatprep.subr.bf16.mxu0 %v2067_v5  ;;  %1575 = vmatprep.mubr.msk.f32.mxu0 %vm2068_vm1, %v2069_v8 }
 0x1bc   : > { %1618 = vmatpush3.bf16.msra.mxu1 %v1617_v57 }
 0x1bd   : > { %1625 = vmatprep.subr.bf16.mxu1 %v2067_v5  ;;  %1636 = vmatpush3.bf16.msra.mxu0 %v1635_v60 }
 0x1bf   : > { %1543 = vmatmul.mubr.msk.f32.vlgmr.msra.gmra.mrb[4].mxu1 %vm684_vm5, %v2443_v27 }
 0x1c0   : > { %1627 = vmatpush3.bf16.msra.mxu1 %v1626_v61  ;;  %1564 = vmatprep.mubr.msk.f32.mxu1 %vm2068_vm1, %v2069_v8 }
 0x1c1   : > { %1628 = vmatprep.subr.bf16.mxu1 %v2067_v5  ;;  %1576 = vmatmul.mubr.msk.f32.vlgmr.msra.gmra.mrb[4].mxu0 %vm684_vm5, %v2443_v27 }
 0x1c4   : > { %1630 = vmatpush3.bf16.msra.mxu1 %v1629_v0 }
 0x1c5   : > { %1637 = vmatprep.subr.bf16.mxu1 %v2067_v5 }
 0x1c7   : > { %1565 = vmatmul.mubr.msk.f32.vlgmr.msra.gmra.mrb[6].mxu1 %vm684_vm5, %v671_v53 }
 0x1c8   : > { %1586 = vmatprep.mubr.msk.f32.mxu1 %vm2068_vm1, %v2069_v8  ;;  %1639 = vmatpush3.bf16.msra.mxu1 %v1638_v4 }
 0x1c9   : > { %1640 = vmatprep.subr.bf16.mxu1 %v2067_v5 }
 0x1cc   : > { %1642 = vmatpush3.bf16.msra.mxu1 %v1641_v7 }
 0x28a   : > { %v827_v9 = vpop.f32.mrb[2].mxu1  ;;  %v983_v11 = vpop.f32.mrb[2].mxu0 }
 0x28b   : > { %v828_v12 = vadd.f32 %v827_v9, %v754_v43  ;;  %v1533_v13 = vpop.f32.mrb[3].mxu1  ;;  %v1555_v14 = vpop.f32.mrb[3].mxu0 }
 0x28d   : > { %v838_v8 = vadd.f32 %v1428_v10, %v828_v12 }
 0x28f   : > { %v1436_v15 = vmul.f32 -1.442695, %v838_v8 }
 0x291   : > { %1756 = vpow2.f32 %v1436_v15 }
 0x292   : > { %v913_v16 = vpop.f32.mrb[4].mxu1 }
 0x293   : > { %v984_v18 = vadd.f32 %v983_v11, %v913_v16  ;;  %v1544_v5 = vpop.f32.mrb[5].mxu1 }
 0x294   : > { %v1153_v19 = vpop.f32.mrb[4].mxu0 }
 0x295   : > { %v994_v20 = vadd.f32 %v1431_v17, %v984_v18  ;;  %v1577_v21 = vpop.f32.mrb[5].mxu0  ;;  %v1154_v31 = vadd.f32 %v1434_v28, %v1153_v19 }
 0x297   : > { %v1437_v22 = vmul.f32 -1.442695, %v994_v20 }
 0x299   : > { %1758 = vpow2.f32 %v1437_v22 }
 0x29a   : > { %v1072_v23 = vpop.f32.mrb[6].mxu1 }
 0x29b   : > { %v1757_v24 = vpop.eup %1756  ;;  %v1566_v25 = vpop.f32.mrb[7].mxu1  ;;  %v1073_v34 = vadd.f32 %v1432_v32, %v1072_v23 }
 0x29c   : > { %v1160_v26 = vadd.f32 1.0, %v1757_v24 }
 0x29e   : > { %1760 = vrcp.f32 %v1160_v26 }
 0x2a3   : > { %v1759_v29 = vpop.eup %1758 }
 0x2a4   : > { %v1166_v30 = vadd.f32 1.0, %v1759_v29 }
 0x2a6   : > { %1762 = vrcp.f32 %v1166_v30 }
 0x2a8   : > { %v1761_v33 = vpop.eup %1760 }
 0x2a9   : > { %v1169_v35 = vmul.f32 %v1761_v33, %v1154_v31 }
 0x2ab   : > { %v1170_v36 = vadd.f32 %v1169_v35, %v1073_v34 }
 0x2ad   : > { %1764 = vtanh.f32 %v1170_v36 }
 0x2b0   : > { %v1763_v37 = vpop.eup %1762 }
 0x2b1   : > { %v1172_v38 = vsub.f32 1.0, %v1763_v37  ;;  %v1174_v41 = vmul.f32 %v1763_v37, %v2443_v27 }
 0x2b7   : > { %v1765_v39 = vpop.eup %1764 }
 0x2b8   : > { %v1173_v40 = vmul.f32 %v1765_v39, %v1172_v38 }
 0x2ba   : > { %v1175_v42 = vadd.f32 %v1174_v41, %v1173_v40 }
 0x2bc   : > { %1587 = vmatmul.mubr.msk.f32.vlgmr.msra.gmra.mrb[8].mxu1 %vm684_vm5, %v1175_v42  ;;  %1177 = vst.msk [vmem:[#allocation16] sm:$0x3] %vm1176_vm11, %v1175_v42 }
 0x2bd   : > { %1959 = shalt.err (!%p1956_p0)
}
 0x2be   : > { %s2666_s20 = sld [smem:[#allocation36_spill]]  ;;  %p2667_p9 = pmov %p2665_p8 }
 0x2c4   : > { %s1960_s28 = scalar_lea.hbm %s2666_s20, 32 }
 0x2c5   : > { %p1961_p1 = scmp.ne.s32.totalorder %s2666_s20, %s1960_s28  ;;  %p1966_p13 = scmp.lt.u32.totalorder %s1960_s28, %s2666_s20 }
 0x2c7   : > { %p1962_p4 = pnand %p1961_p1, %p2667_p9 }
 0x2c9   : > { %p1963_p12 = pneg %p1962_p4 }
 0x2cb   : > { %p1968_p3 = pnand %p1966_p13, %p1963_p12 }
 0x2cd   : > { %1971 = shalt.err (!%p1968_p3)
}
 0x2ce   : > { %p2668_p5 = pmov %p2665_p8  ;;  %s2669_s24 = sld [smem:[#allocation30_spill]]  ;;  %v1438_v27 = vld [vmem:[#allocation13] ss:$0 sm:$0xff] }
 0x2cf   : > { %s1441_s17 = sshll.u32 %s2181_s10, 5  ;;  %s1277_s15 = sshll.u32 %s558_s25, 4  ;;  %s2553_s15 = int_to_ptr.vmem [resolvable:$true] %s1277_s15 }
 0x2d0   : > { %1669 = dma.vmem_to_hbm [thread:$0]  (%p2668_p5), %s1289_s19, 32, %s2666_s20, [#allocation17]  }
 0x2d1   : > { %s2670_s28 = sld [smem:[#allocation35_spill]]  ;;  %s1264_s19 = scalar_lea.sflag [#allocation6], %s556_s29 }
 0x2d2   : > { %s1972_s21 = scalar_lea.vmem %s2553_s15, 32  ;;  %s2071_s30 = smov [#allocation15]  }
 0x2d3   : > { %p1973_p8 = scmp.ne.s32.totalorder %s2553_s15, %s1972_s21  ;;  %s1976_s18 = sshll.u32 %s2071_s30, 4  ;;  %s1977_s18 = int_to_ptr.vmem [resolvable:$false] %s1976_s18 }
 0x2d4   : > { %p2672_p7 = scmp.ne.s32.totalorder %s2669_s24, 0  ;;  %s1978_s26 = scalar_lea.vmem %s1977_s18, 64 }
 0x2d5   : > { %p1979_p2 = scmp.lt.s32.totalorder %s2553_s15, %s1977_s18  ;;  %p1980_p6 = scmp.lt.s32.totalorder %s1978_s26, %s1972_s21 }
 0x2d6   : > { %p1974_p11 = pnand %p1973_p8, %p2672_p7 }
 0x2d7   : > { %s2671_s16 = smov %s2670_s28  ;;  %s2551_s0 = scalar_lea.hbm %s2670_s28, %s1441_s17 }
 0x2d8   : > { %p1975_p10 = pneg %p1974_p11  ;;  %p1981_p0 = por %p1980_p6, %p1979_p2 }
 0x2da   : > { %p1982_p1 = pnand %p1981_p0, %p1975_p10 }
 0x38f   : > { %v1258_v43 = vpop.f32.mrb[8].mxu1 }
 0x390   : > { %v1259_v44 = vadd.f32 %v1438_v27, %v1258_v43  ;;  %v1588_v45 = vpop.f32.mrb[9].mxu1 }
 0x392   : > { %1262 = vst [vmem:[%s558_s25] sm:$0x3] %v1259_v44 }
 0x393   : > { %1985 = shalt.err (!%p1982_p1)
}
 0x394   : > { %s1986_s29 = scalar_lea.hbm %s2551_s0, 32  ;;  %s1990_s17 = scalar_lea.hbm %s2671_s16, 256 }
 0x395   : > { %p1987_p9 = scmp.ne.s32.totalorder %s2551_s0, %s1986_s29  ;;  %p1991_p13 = scmp.lt.u32.totalorder %s2551_s0, %s2671_s16 }
 0x396   : > { %p1992_p3 = scmp.lt.u32.totalorder %s1990_s17, %s1986_s29  ;;  %p1994_p8 = scmp.lt.u32.totalorder %s1986_s29, %s2551_s0 }
 0x397   : > { %p1988_p4 = pnand %p1987_p9, %p2672_p7 }
 0x398   : > { %p1993_p5 = por %p1992_p3, %p1991_p13 }
 0x399   : > { %p1989_p12 = pneg %p1988_p4 }
 0x39a   : > { %p1995_p11 = por %p1994_p8, %p1993_p5 }
 0x39c   : > { %p1996_p10 = pnand %p1995_p11, %p1989_p12 }
 0x39e   : > { %1999 = shalt.err (!%p1996_p10)
}
 0x39f   : > { %1667 = dma.vmem_to_hbm [thread:$0]  (%p2672_p7), %s2553_s15, 32, %s2551_s0, %s1264_s19  }
 0x3a0   : > { %p2673_p2 = scmp.eq.s32.totalorder %s2181_s10, 7 }
 0x3a2   : > { %2035 = dma.done.wait (%p2673_p2), [#allocation17], 32   ;;  %p2674_p6 = pmov %p2673_p2 }
 0x3a4   : > { %2037 = vsyncadd (%p2674_p6), [#allocation17], 4294967264 }
 0x3a5 PF: > { %s2675_s28 = sld [smem:[#allocation27_spill]]  ;;  %s2676_s21 = sld [smem:[#allocation25_spill]] }
 0x3a6   : > { %s2677_s30 = sld [smem:[#allocation31_spill]] }
 0x3ab   : > { %p1710_p0 = scmp.ge.s32.totalorder %s2675_s28, 2  ;;  %s1304_s18 = sand.u32 1, %s2676_s21  }
 0x3ac   : > { %p2678_p1 = scmp.ne.s32.totalorder %s2677_s30, 0  ;;  %s1305_s26 = scalar_lea.sflag [#allocation6], %s1304_s18 }
 0x3ae   : > { %p1693_p9 = pnand %p1710_p0, %p2678_p1 }
 0x3b0   : > { %2039 = dma.done.wait (!%p1693_p9), %s1305_s26, 32  }
 0x3b1   : > { %2041 = vsyncadd (!%p1693_p9), %s1305_s26, 4294967264  ;;  %s2679_s29 = sld [smem:[#allocation28_spill]]  ;;  %s2680_s24 = sld [smem:[#allocation26_spill]] }
 0x3b2   : > { %s2681_s28 = sld [smem:[#allocation29_spill]]  ;;  %s2682_s26 = smov %s2048_s27 }
 0x3b7   : > { %p38_p7 = scmp.ge.s32.totalorder %s2679_s29, 10   ;;  %s2683_s27 = smov %s2680_s24 }
 0x3b9   :  { %40 = sbr.rel (!%p38_p7) target bundleno = 30 (0x1e), region = 145 }
 0x3c0   :  { %1310 = vsyncpa [#allocation5], 1 }
 0x3c1   :  { %1312 = vsyncpa [#allocation5 + $0x1], 1 }
 0x3c2   :  { %1313 = vsyncpa [#allocation8], 1 }
 0x3c3   :  { %1314 = vsyncpa [#allocation11], 1 }
 0x3c4   :  { %1315 = vsyncpa [#allocation14], 1 }
 0x3c5   :  { %1316 = vsyncpa [#allocation6], 1 }
 0x3c6   :  { %1318 = vsyncpa [#allocation6 + $0x1], 1 }
 0x3c7   :  { %1319 = vsyncpa [#allocation17], 1 }

</bundles_post_ra>
